<compile_context>
chip_gen: v7x
topology: tpu7x:2x2x1
jax: 0.10.0
libtpu: 0.0.40
codegen_flags: <defaults>
</compile_context>

<pallas_src>
import jax
import jax.numpy as jnp
from jax.experimental import pallas as pl
from jax.experimental.pallas import tpu as pltpu

_LANE = 128
_SUB = 8
_TARGET_BLOCK_ELEMS = 256 * 1024   # ~1 MiB per f32 input block


def _round_up(x, m):
    return ((x + m - 1) // m) * m


def _choose_tiling(G, HW):
    """Pick (HW_pad, S, R, G_pad, BG) so blocks are large but VMEM-safe."""
    HW_pad = _round_up(HW, _LANE)
    S = HW_pad // _LANE                      # spatial rows of 128 lanes
    if S <= _SUB:
        R = S                                # single spatial block (full dim)
    else:
        max_r = max(_SUB, (_TARGET_BLOCK_ELEMS // (_SUB * _LANE)) // _SUB * _SUB)
        R = min(_round_up(S, _SUB), max_r)   # multiple of 8
        S = _round_up(S, R)                  # pad so R tiles S
        HW_pad = S * _LANE
    # Widen over the fused N*C axis when the spatial block is small.
    BG = _round_up(min(G, max(1, _TARGET_BLOCK_ELEMS // (R * _LANE))), _SUB)
    G_pad = _round_up(G, BG)
    return HW_pad, S, R, G_pad, BG


def _tversky_sums_kernel(p_ref, t_ref, tp_ref, fn_ref, fp_ref):
    """Accumulate lane-wise partial sums of tp / fn / fp for one (g, spatial) block."""
    j = pl.program_id(1)                     # spatial block index ("arbitrary" axis)

    p = p_ref[...].astype(jnp.float32)       # (BG, R, 128)
    t = t_ref[...].astype(jnp.float32)

    # Lane-dense partials (BG, 128): reductions over the sublane-folded spatial
    # rows are cheap vector adds; the final 128-lane reduce is done once in the
    # JAX wrapper.
    tp = jnp.sum(p * t, axis=1)
    fn = jnp.sum((1.0 - p) * t, axis=1)
    fp = jnp.sum(p * (1.0 - t), axis=1)

    @pl.when(j == 0)
    def _():
        tp_ref[...] = tp
        fn_ref[...] = fn
        fp_ref[...] = fp

    @pl.when(j != 0)
    def _():
        tp_ref[...] += tp
        fn_ref[...] += fn
        fp_ref[...] += fp


def focal_tversky_loss(prediction, target, *, reduction='mean', alpha=0.5,
                       gamma=1.0, epsilon=1e-6):
    """Pallas implementation of FocalTverskyLoss.forward.

    prediction: (N, C, H, W) float (probabilities)
    target:     (N, C, H, W), (N, 1, H, W) or (N, H, W) float/int mask
    """
    assert 0.0 < alpha < 1.0, 'Error. Alpha should be between 0 and 1'
    assert prediction.ndim == 4, 'prediction must be (N, C, H, W)'

    if target.ndim == 3:
        target = target[:, None, :, :]
    # TODO(synk): a channel-singleton target is materialized at full (N,C,H,W)
    # size here; a broadcast-aware index_map would avoid the extra HBM traffic.
    target = jnp.broadcast_to(target, prediction.shape)

    N, C, H, W = prediction.shape
    G, HW = N * C, H * W
    HW_pad, S, R, G_pad, BG = _choose_tiling(G, HW)
    n_g, n_sp = G_pad // BG, S // R

    # Keep native dtypes (no f32 upcast in HBM); zero padding is neutral for
    # all three sums (p=0, t=0 contributes 0 to tp, fn and fp).
    p2 = prediction.reshape(G, HW)
    t2 = target.reshape(G, HW)
    if G_pad != G or HW_pad != HW:
        p2 = jnp.pad(p2, ((0, G_pad - G), (0, HW_pad - HW)))
        t2 = jnp.pad(t2, ((0, G_pad - G), (0, HW_pad - HW)))
    p3 = p2.reshape(G_pad, S, _LANE)
    t3 = t2.reshape(G_pad, S, _LANE)

    part_shape = jax.ShapeDtypeStruct((G_pad, _LANE), jnp.float32)
    out_spec = pl.BlockSpec((BG, _LANE), lambda i, j: (i, 0))

    tp_part, fn_part, fp_part = pl.pallas_call(
        _tversky_sums_kernel,
        out_shape=(part_shape, part_shape, part_shape),
        grid_spec=pltpu.PrefetchScalarGridSpec(
            num_scalar_prefetch=0,
            grid=(n_g, n_sp),
            in_specs=[
                pl.BlockSpec((BG, R, _LANE), lambda i, j: (i, j, 0)),
                pl.BlockSpec((BG, R, _LANE), lambda i, j: (i, j, 0)),
            ],
            out_specs=[out_spec, out_spec, out_spec],
        ),
        compiler_params=pltpu.CompilerParams(
            dimension_semantics=("parallel", "arbitrary")),
    )(p3, t3)

    # Final 128-lane reduce + Tversky combine on tiny (N, C) tensors in JAX.
    tp = jnp.sum(tp_part[:G], axis=-1).reshape(N, C)
    fn = jnp.sum(fn_part[:G], axis=-1).reshape(N, C)
    fp = jnp.sum(fp_part[:G], axis=-1).reshape(N, C)

    tversky = (tp + epsilon) / (tp + alpha * fn + (1.0 - alpha) * fp + epsilon)
    base = 1.0 - tversky
    focal = base if gamma == 1.0 else jnp.power(base, gamma)
    ftversky = jnp.mean(focal, axis=1)                       # (N,)

    if reduction == 'mean':
        return ftversky.mean()
    # NOTE: the PyTorch module's 'sum' branch is unreachable (duplicated
    # `reduction == 'mean'` check); any other reduction returns per-batch values.
    return ftversky


def focal_tversky_loss_ref(prediction, target, *, reduction='mean', alpha=0.5,
                           gamma=1.0, epsilon=1e-6):
    """Pure-JAX reference mirroring the PyTorch module."""
    if target.ndim == 3:
        target = target[:, None, :, :]
    p = prediction.astype(jnp.float32)
    t = target.astype(jnp.float32)
    tp = jnp.sum(p * t, axis=(-1, -2))
    fn = jnp.sum((1.0 - p) * t, axis=(-1, -2))
    fp = jnp.sum(p * (1.0 - t), axis=(-1, -2))
    ftversky = jnp.mean(
        jnp.power(1.0 - (tp + epsilon) /
                  (tp + alpha * fn + (1.0 - alpha) * fp + epsilon), gamma),
        axis=1)
    if reduction == 'mean':
        return ftversky.mean()
    return ftversky


if __name__ == "__main__":
    key = jax.random.PRNGKey(0)
    k1, k2, k3 = jax.random.split(key, 3)

    N, C, H, W = 2, 4, 16, 16
    logits = jax.random.normal(k1, (N, C, H, W), dtype=jnp.float32)
    prediction = jax.nn.softmax(logits, axis=1)                     # probabilities
    labels = jax.random.randint(k2, (N, H, W), 0, C)
    target = jnp.transpose(jax.nn.one_hot(labels, C, dtype=jnp.float32),
                           (0, 3, 1, 2))                            # (N, C, H, W)

    out = jax.block_until_ready(focal_tversky_loss(prediction, target))
    ref = jax.block_until_ready(focal_tversky_loss_ref(prediction, target))
    assert jnp.allclose(out, ref, rtol=1e-5, atol=1e-6), (out, ref)

    # 3-D target path (broadcast over channels) with non-default alpha/gamma.
    mask = (jax.random.uniform(k3, (N, H, W)) > 0.5).astype(jnp.float32)
    out2 = jax.block_until_ready(
        focal_tversky_loss(prediction, mask, alpha=0.3, gamma=0.75))
    ref2 = jax.block_until_ready(
        focal_tversky_loss_ref(prediction, mask, alpha=0.3, gamma=0.75))
    assert jnp.allclose(out2, ref2, rtol=1e-5, atol=1e-6), (out2, ref2)

    print("KERNEL_OK")
</pallas_src>

<mosaic_0001>
module attributes {stable_mosaic.version = 11 : i64} {
  func.func @_tversky_sums_kernel(%arg0: i32, %arg1: i32, %arg2: memref<8x2x128xf32, #tpu.memory_space<vmem>>, %arg3: memref<8x2x128xf32, #tpu.memory_space<vmem>>, %arg4: memref<8x128xf32, #tpu.memory_space<vmem>>, %arg5: memref<8x128xf32, #tpu.memory_space<vmem>>, %arg6: memref<8x128xf32, #tpu.memory_space<vmem>>) attributes {dimension_semantics = [#tpu.dimension_semantics<parallel>, #tpu.dimension_semantics<arbitrary>], iteration_bounds = array<i64: 1, 1>, scalar_prefetch = 0 : i64, scratch_operands = 0 : i64, tpu.core_type = #tpu.core_type<tc>, window_params = [{transform_indices = @transform_0, window_bounds = array<i64: 8, 2, 128>}, {transform_indices = @transform_1, window_bounds = array<i64: 8, 2, 128>}, {transform_indices = @transform_2, window_bounds = array<i64: 8, 128>}, {transform_indices = @transform_3, window_bounds = array<i64: 8, 128>}, {transform_indices = @transform_4, window_bounds = array<i64: 8, 128>}]} {
    %c0 = arith.constant 0 : index
    %c0_0 = arith.constant 0 : index
    %c0_1 = arith.constant 0 : index
    %0 = vector.load %arg2[%c0, %c0_0, %c0_1] : memref<8x2x128xf32, #tpu.memory_space<vmem>>, vector<8x2x128xf32>
    %c0_2 = arith.constant 0 : index
    %c0_3 = arith.constant 0 : index
    %c0_4 = arith.constant 0 : index
    %1 = vector.load %arg3[%c0_2, %c0_3, %c0_4] : memref<8x2x128xf32, #tpu.memory_space<vmem>>, vector<8x2x128xf32>
    %2 = arith.mulf %0, %1 : vector<8x2x128xf32>
    %cst = arith.constant dense<0.000000e+00> : vector<8x128xf32>
    %3 = vector.multi_reduction <add>, %2, %cst [1] : vector<8x2x128xf32> to vector<8x128xf32>
    %cst_5 = arith.constant 1.000000e+00 : f32
    %4 = vector.broadcast %cst_5 : f32 to vector<8x2x128xf32>
    %5 = arith.subf %4, %0 : vector<8x2x128xf32>
    %6 = arith.mulf %5, %1 : vector<8x2x128xf32>
    %cst_6 = arith.constant dense<0.000000e+00> : vector<8x128xf32>
    %7 = vector.multi_reduction <add>, %6, %cst_6 [1] : vector<8x2x128xf32> to vector<8x128xf32>
    %cst_7 = arith.constant 1.000000e+00 : f32
    %8 = vector.broadcast %cst_7 : f32 to vector<8x2x128xf32>
    %9 = arith.subf %8, %1 : vector<8x2x128xf32>
    %10 = arith.mulf %0, %9 : vector<8x2x128xf32>
    %cst_8 = arith.constant dense<0.000000e+00> : vector<8x128xf32>
    %11 = vector.multi_reduction <add>, %10, %cst_8 [1] : vector<8x2x128xf32> to vector<8x128xf32>
    %c0_i32 = arith.constant 0 : i32
    %12 = arith.cmpi eq, %arg1, %c0_i32 : i32
    %13 = arith.extui %12 : i1 to i32
    %c0_i32_9 = arith.constant 0 : i32
    %14 = arith.cmpi ne, %13, %c0_i32_9 : i32
    scf.if %14 {
      %c0_12 = arith.constant 0 : index
      %c0_13 = arith.constant 0 : index
      %18 = vector.load %arg4[%c0_12, %c0_13] : memref<8x128xf32, #tpu.memory_space<vmem>>, vector<8x128xf32>
      tpu.vector_store %arg4[%c0_12, %c0_13], %3 {strides = array<i32>} : memref<8x128xf32, #tpu.memory_space<vmem>>, vector<8x128xf32>,
      %c0_14 = arith.constant 0 : index
      %c0_15 = arith.constant 0 : index
      %19 = vector.load %arg5[%c0_14, %c0_15] : memref<8x128xf32, #tpu.memory_space<vmem>>, vector<8x128xf32>
      tpu.vector_store %arg5[%c0_14, %c0_15], %7 {strides = array<i32>} : memref<8x128xf32, #tpu.memory_space<vmem>>, vector<8x128xf32>,
      %c0_16 = arith.constant 0 : index
      %c0_17 = arith.constant 0 : index
      %20 = vector.load %arg6[%c0_16, %c0_17] : memref<8x128xf32, #tpu.memory_space<vmem>>, vector<8x128xf32>
      tpu.vector_store %arg6[%c0_16, %c0_17], %11 {strides = array<i32>} : memref<8x128xf32, #tpu.memory_space<vmem>>, vector<8x128xf32>,
    } else {
    }
    %c0_i32_10 = arith.constant 0 : i32
    %15 = arith.cmpi ne, %arg1, %c0_i32_10 : i32
    %16 = arith.extui %15 : i1 to i32
    %c0_i32_11 = arith.constant 0 : i32
    %17 = arith.cmpi ne, %16, %c0_i32_11 : i32
    scf.if %17 {
      %c0_12 = arith.constant 0 : index
      %c0_13 = arith.constant 0 : index
      %18 = vector.load %arg4[%c0_12, %c0_13] : memref<8x128xf32, #tpu.memory_space<vmem>>, vector<8x128xf32>
      %19 = arith.addf %18, %3 : vector<8x128xf32>
      %c0_14 = arith.constant 0 : index
      %c0_15 = arith.constant 0 : index
      %20 = vector.load %arg4[%c0_14, %c0_15] : memref<8x128xf32, #tpu.memory_space<vmem>>, vector<8x128xf32>
      tpu.vector_store %arg4[%c0_14, %c0_15], %19 {strides = array<i32>} : memref<8x128xf32, #tpu.memory_space<vmem>>, vector<8x128xf32>,
      %c0_16 = arith.constant 0 : index
      %c0_17 = arith.constant 0 : index
      %21 = vector.load %arg5[%c0_16, %c0_17] : memref<8x128xf32, #tpu.memory_space<vmem>>, vector<8x128xf32>
      %22 = arith.addf %21, %7 : vector<8x128xf32>
      %c0_18 = arith.constant 0 : index
      %c0_19 = arith.constant 0 : index
      %23 = vector.load %arg5[%c0_18, %c0_19] : memref<8x128xf32, #tpu.memory_space<vmem>>, vector<8x128xf32>
      tpu.vector_store %arg5[%c0_18, %c0_19], %22 {strides = array<i32>} : memref<8x128xf32, #tpu.memory_space<vmem>>, vector<8x128xf32>,
      %c0_20 = arith.constant 0 : index
      %c0_21 = arith.constant 0 : index
      %24 = vector.load %arg6[%c0_20, %c0_21] : memref<8x128xf32, #tpu.memory_space<vmem>>, vector<8x128xf32>
      %25 = arith.addf %24, %11 : vector<8x128xf32>
      %c0_22 = arith.constant 0 : index
      %c0_23 = arith.constant 0 : index
      %26 = vector.load %arg6[%c0_22, %c0_23] : memref<8x128xf32, #tpu.memory_space<vmem>>, vector<8x128xf32>
      tpu.vector_store %arg6[%c0_22, %c0_23], %25 {strides = array<i32>} : memref<8x128xf32, #tpu.memory_space<vmem>>, vector<8x128xf32>,
    } else {
    }
    return
  }
  func.func @transform_0(%arg0: i32, %arg1: i32) -> (i32, i32, i32) {
    %c0_i32 = arith.constant 0 : i32
    %c0_i32_0 = arith.constant 0 : i32
    return %arg0, %arg1, %c0_i32 : i32, i32, i32
  }
  func.func @transform_1(%arg0: i32, %arg1: i32) -> (i32, i32, i32) {
    %c0_i32 = arith.constant 0 : i32
    %c0_i32_0 = arith.constant 0 : i32
    return %arg0, %arg1, %c0_i32 : i32, i32, i32
  }
  func.func @transform_2(%arg0: i32, %arg1: i32) -> (i32, i32) {
    %c0_i32 = arith.constant 0 : i32
    %c0_i32_0 = arith.constant 0 : i32
    return %arg0, %c0_i32 : i32, i32
  }
  func.func @transform_3(%arg0: i32, %arg1: i32) -> (i32, i32) {
    %c0_i32 = arith.constant 0 : i32
    %c0_i32_0 = arith.constant 0 : i32
    return %arg0, %c0_i32 : i32, i32
  }
  func.func @transform_4(%arg0: i32, %arg1: i32) -> (i32, i32) {
    %c0_i32 = arith.constant 0 : i32
    %c0_i32_0 = arith.constant 0 : i32
    return %arg0, %c0_i32 : i32, i32
  }
}

</mosaic_0001>

<bundles_post_ra>
// kernel: tpu_custom_call.1
= control target key start
LH: loop header
LB: loop body
LE: loop exit
PB: predicated region body
PF: predicated region fallthrough
CT: control target
= control target key end

     0   :  { %10 = vsyncpa [#allocation3], 0  ;;  %s796_s0 = inlined_call_operand.hbm [shape: f32[8,2,128], index: 0, kind: input, shape index: {}]   ;;  %s797_s1 = inlined_call_operand.hbm [shape: f32[8,2,128], index: 1, kind: input, shape index: {}]   ;;  %s798_s2 = inlined_call_operand.hbm [shape: f32[8,128], index: 2, kind: output, shape index: {0}]   ;;  %s799_s3 = inlined_call_operand.hbm [shape: f32[8,128], index: 3, kind: output, shape index: {1}]   ;;  %s800_s4 = inlined_call_operand.hbm [shape: f32[8,128], index: 4, kind: output, shape index: {2}]  }
   0x1   :  { %11 = vsyncpa [#allocation6], 0 }
   0x2   :  { %12 = vsyncpa [#allocation4], 0 }
   0x3   :  { %13 = vsyncpa [#allocation9], 0  ;;  %s567_s15 = smov [#allocation2]   ;;  %s449_s19 = scalar_lea.hbm %s796_s0, 256 }
   0x4   :  { %s19_s16 = sshll.u32 %s567_s15, 4  ;;  %p450_p0 = scmp.ne.s32.totalorder %s796_s0, %s449_s19  ;;  %s20_s16 = int_to_ptr.vmem [resolvable:$true] %s19_s16 }
   0x5   :  { %p453_p1 = scmp.lt.u32.totalorder %s449_s19, %s796_s0 }
   0x7   :  { %p455_p2 = pnand %p453_p1, %p450_p0 }
   0x9   :  { %458 = shalt.err (!%p455_p2)
}
   0xa   :  { %s459_s24 = scalar_lea.vmem %s20_s16, 256  ;;  %p464_p4 = scmp.lt.s32.totalorder %s20_s16, %s20_s16 }
   0xb   :  { %p460_p3 = scmp.ne.s32.totalorder %s20_s16, %s459_s24  ;;  %p465_p5 = scmp.lt.s32.totalorder %s459_s24, %s459_s24 }
   0xd   :  { %p466_p6 = por %p465_p5, %p464_p4 }
   0xf   :  { %p467_p7 = pnand %p466_p6, %p460_p3 }
  0x11   :  { %470 = shalt.err (!%p467_p7)
}
  0x12   :  { %s568_s25 = smov 32   ;;  %s569_s26 = smov 2  }
  0x13   :  { %25 = dma.hbm_to_vmem [thread:$0]  %s796_s0, 256, %s20_s16, [#allocation3], %s568_s25, %s568_s25, %s569_s26  }
  0x14   :  { %s570_s29 = smov [#allocation5]   ;;  %s471_s7 = scalar_lea.hbm %s797_s1, 256 }
  0x15   :  { %s31_s30 = sshll.u32 %s570_s29, 4  ;;  %p472_p8 = scmp.ne.s32.totalorder %s797_s1, %s471_s7  ;;  %s32_s30 = int_to_ptr.vmem [resolvable:$true] %s31_s30 }
  0x16   :  { %p475_p9 = scmp.lt.u32.totalorder %s471_s7, %s797_s1 }
  0x18   :  { %p477_p10 = pnand %p475_p9, %p472_p8 }
  0x1a   :  { %480 = shalt.err (!%p477_p10)
}
  0x1b   :  { %s481_s12 = scalar_lea.vmem %s32_s30, 256  ;;  %p486_p12 = scmp.lt.s32.totalorder %s32_s30, %s32_s30 }
  0x1c   :  { %p482_p11 = scmp.ne.s32.totalorder %s32_s30, %s481_s12  ;;  %p487_p13 = scmp.lt.s32.totalorder %s481_s12, %s481_s12 }
  0x1e   :  { %p488_p0 = por %p487_p13, %p486_p12 }
  0x20   :  { %p489_p1 = pnand %p488_p0, %p482_p11 }
  0x22   :  { %492 = shalt.err (!%p489_p1)
}
  0x23   :  { %37 = dma.hbm_to_vmem [thread:$0]  %s797_s1, 256, %s32_s30, [#allocation6], %s568_s25, %s568_s25, %s569_s26  }
  0x24   :  { %559 = dma.done.wait [#allocation3], 256  }
  0x25   :  { %560 = vsyncadd [#allocation3], 4294967040 }
  0x26   :  { %561 = dma.done.wait [#allocation6], 256  }
  0x27   :  { %562 = vsyncadd [#allocation6], 4294967040  ;;  %vm68_vm0 = vcmask 1041408   ;;  %v623_v0 = vld [vmem:[#allocation2] sm:$0x3]  ;;  %vm281_vm1 = vcmask 1041409  }
  0x28   :  { %v625_v1 = vld [vmem:[#allocation2 + $0x2] sm:$0x3]  ;;  %v627_v2 = vld [vmem:[#allocation2 + $0x4] sm:$0x3]  ;;  %v629_v3 = vld [vmem:[#allocation2 + $0x6] sm:$0x3] }
  0x29   :  { %v631_v4 = vld [vmem:[#allocation2 + $0x8] sm:$0x3]  ;;  %v633_v5 = vld [vmem:[#allocation2 + $0xa] sm:$0x3]  ;;  %v635_v6 = vld [vmem:[#allocation2 + $0xc] sm:$0x3] }
  0x2a   :  { %v637_v7 = vld [vmem:[#allocation2 + $0xe] sm:$0x3]  ;;  %v639_v8 = vld [vmem:[#allocation5] sm:$0x3]  ;;  %v641_v9 = vld [vmem:[#allocation5 + $0x2] sm:$0x3] }
  0x2b   :  { %v643_v10 = vld [vmem:[#allocation5 + $0x4] sm:$0x3]  ;;  %v645_v11 = vld [vmem:[#allocation5 + $0x6] sm:$0x3]  ;;  %v647_v12 = vld [vmem:[#allocation5 + $0x8] sm:$0x3]  ;;  %v655_v15 = vmul.f32 %v639_v8, %v623_v0  ;;  %v659_v16 = vmul.f32 %v641_v9, %v625_v1 }
  0x2c   :  { %v649_v13 = vld [vmem:[#allocation5 + $0xa] sm:$0x3]  ;;  %v651_v14 = vld [vmem:[#allocation5 + $0xc] sm:$0x3]  ;;  %v663_v17 = vmul.f32 %v643_v10, %v627_v2  ;;  %v667_v18 = vmul.f32 %v645_v11, %v629_v3  ;;  %v669_v19 = vld [vmem:[#allocation5 + $0xe] sm:$0x3] }
  0x2d   :  { %v125_v20 = vsub.f32 1.0, %v623_v0  ;;  %v126_v21 = vsub.f32 1.0, %v625_v1  ;;  %v127_v22 = vsub.f32 1.0, %v627_v2  ;;  %v128_v23 = vsub.f32 1.0, %v629_v3  ;;  %s571_s1 = smov [#allocation8]  }
  0x2e   :  { %v129_v24 = vsub.f32 1.0, %v631_v4  ;;  %v130_v25 = vsub.f32 1.0, %v633_v5  ;;  %v131_v26 = vsub.f32 1.0, %v635_v6  ;;  %v132_v27 = vsub.f32 1.0, %v637_v7  ;;  %s415_s14 = sshll.u32 %s571_s1, 4  ;;  %s416_s14 = int_to_ptr.vmem [resolvable:$true] %s415_s14 }
  0x2f   :  { %v133_v28 = vmul.f32 %v125_v20, %v639_v8  ;;  %v134_v29 = vmul.f32 %v126_v21, %v641_v9  ;;  %v135_v30 = vmul.f32 %v127_v22, %v643_v10  ;;  %v136_v31 = vmul.f32 %v128_v23, %v645_v11  ;;  %s493_s15 = scalar_lea.vmem %s416_s14, 128  ;;  %p498_p3 = scmp.lt.s32.totalorder %s416_s14, %s416_s14 }
  0x30   :  { %v137_v32 = vmul.f32 %v129_v24, %v647_v12  ;;  %v138_v33 = vmul.f32 %v130_v25, %v649_v13  ;;  %v139_v34 = vmul.f32 %v131_v26, %v651_v14  ;;  %v140_v35 = vmul.f32 %v132_v27, %v669_v19  ;;  %p494_p2 = scmp.ne.s32.totalorder %s416_s14, %s493_s15  ;;  %p499_p4 = scmp.lt.s32.totalorder %s493_s15, %s493_s15 }
  0x31   :  { %v141_v36 = vsel %vm68_vm0, %v133_v28, 0.0  ;;  %v148_v37 = vsel %vm68_vm0, %v134_v29, 0.0  ;;  %v155_v38 = vsel %vm68_vm0, %v135_v30, 0.0  ;;  %v162_v39 = vsel %vm68_vm0, %v136_v31, 0.0 }
  0x32   :  { %v142_v40 = vrot.slane %v141_v36, 4  ;;  %v149_v41 = vrot.slane %v148_v37, 4  ;;  %v156_v42 = vrot.slane %v155_v38, 4  ;;  %v163_v43 = vrot.slane %v162_v39, 4  ;;  %p500_p5 = por %p499_p4, %p498_p3 }
  0x33   :  { %v169_v44 = vsel %vm68_vm0, %v137_v32, 0.0  ;;  %v176_v45 = vsel %vm68_vm0, %v138_v33, 0.0  ;;  %v183_v46 = vsel %vm68_vm0, %v139_v34, 0.0  ;;  %v190_v47 = vsel %vm68_vm0, %v140_v35, 0.0 }
  0x34   :  { %v143_v48 = vadd.f32 %v142_v40, %v141_v36  ;;  %v150_v49 = vadd.f32 %v149_v41, %v148_v37  ;;  %v157_v50 = vadd.f32 %v156_v42, %v155_v38  ;;  %v164_v51 = vadd.f32 %v163_v43, %v162_v39  ;;  %p501_p6 = pnand %p500_p5, %p494_p2 }
  0x35   :  { %v170_v52 = vrot.slane %v169_v44, 4  ;;  %v177_v53 = vrot.slane %v176_v45, 4  ;;  %v184_v54 = vrot.slane %v183_v46, 4  ;;  %v191_v55 = vrot.slane %v190_v47, 4 }
  0x36   :  { %vm283_vm2 = vcmask 1042434   ;;  %v144_v56 = vrot.slane %v143_v48, 2  ;;  %v151_v57 = vrot.slane %v150_v49, 2  ;;  %v158_v58 = vrot.slane %v157_v50, 2 }
  0x37   :  { %v165_v59 = vrot.slane %v164_v51, 2  ;;  %vm285_vm3 = vcmask 1043459   ;;  %v171_v60 = vadd.f32 %v170_v52, %v169_v44  ;;  %v178_v61 = vadd.f32 %v177_v53, %v176_v45 }
  0x38   :  { %v185_v62 = vadd.f32 %v184_v54, %v183_v46  ;;  %v192_v63 = vadd.f32 %v191_v55, %v190_v47  ;;  %vm287_vm4 = vcmask 1044484   ;;  %v145_v20 = vadd.f32 %v144_v56, %v143_v48 }
  0x39   :  { %v152_v21 = vadd.f32 %v151_v57, %v150_v49  ;;  %v159_v22 = vadd.f32 %v158_v58, %v157_v50  ;;  %v166_v23 = vadd.f32 %v165_v59, %v164_v51  ;;  %vm289_vm5 = vcmask 1045509  }
  0x3a   :  { %v172_v24 = vrot.slane %v171_v60, 2  ;;  %v179_v25 = vrot.slane %v178_v61, 2  ;;  %v186_v26 = vrot.slane %v185_v62, 2  ;;  %v193_v27 = vrot.slane %v192_v63, 2 }
  0x3b   :  { %vm291_vm6 = vcmask 1046534   ;;  %v146_v28 = vrot.slane %v145_v20, 1  ;;  %v153_v29 = vrot.slane %v152_v21, 1  ;;  %v160_v30 = vrot.slane %v159_v22, 1 }
  0x3c   :  { %v167_v31 = vrot.slane %v166_v23, 1  ;;  %vm293_vm7 = vcmask 1047559   ;;  %v173_v32 = vadd.f32 %v172_v24, %v171_v60  ;;  %v180_v33 = vadd.f32 %v179_v25, %v178_v61 }
  0x3d   :  { %v187_v34 = vadd.f32 %v186_v26, %v185_v62  ;;  %v194_v35 = vadd.f32 %v193_v27, %v192_v63  ;;  %v147_v36 = vadd.f32 %v146_v28, %v145_v20  ;;  %v154_v37 = vadd.f32 %v153_v29, %v152_v21 }
  0x3e   :  { %v161_v38 = vadd.f32 %v160_v30, %v159_v22  ;;  %v168_v39 = vadd.f32 %v167_v31, %v166_v23  ;;  %v174_v40 = vrot.slane %v173_v32, 1  ;;  %v181_v41 = vrot.slane %v180_v33, 1 }
  0x3f   :  { %v188_v42 = vrot.slane %v187_v34, 1  ;;  %v195_v43 = vrot.slane %v194_v35, 1  ;;  %v305_v44 = vsel %vm281_vm1, %v154_v37, %v147_v36  ;;  %v64_v45 = vmul.f32 %v647_v12, %v631_v4 }
  0x40   :  { %v65_v46 = vmul.f32 %v649_v13, %v633_v5  ;;  %v66_v47 = vmul.f32 %v651_v14, %v635_v6  ;;  %v175_v48 = vadd.f32 %v174_v40, %v173_v32  ;;  %v182_v49 = vadd.f32 %v181_v41, %v180_v33 }
  0x41   :  { %v189_v50 = vadd.f32 %v188_v42, %v187_v34  ;;  %v196_v51 = vadd.f32 %v195_v43, %v194_v35  ;;  %v306_v52 = vsel %vm283_vm2, %v161_v38, %v305_v44  ;;  %v67_v53 = vmul.f32 %v669_v19, %v637_v7 }
  0x42   :  { %v69_v54 = vsel %vm68_vm0, %v655_v15, 0.0  ;;  %v76_v55 = vsel %vm68_vm0, %v659_v16, 0.0  ;;  %v307_v56 = vsel %vm285_vm3, %v168_v39, %v306_v52  ;;  %v83_v59 = vsel %vm68_vm0, %v663_v17, 0.0 }
  0x43   :  { %v70_v57 = vrot.slane %v69_v54, 4  ;;  %v77_v58 = vrot.slane %v76_v55, 4  ;;  %v308_v60 = vsel %vm287_vm4, %v175_v48, %v307_v56  ;;  %v84_v61 = vrot.slane %v83_v59, 4 }
  0x44   :  { %v90_v62 = vsel %vm68_vm0, %v667_v18, 0.0  ;;  %v97_v15 = vsel %vm68_vm0, %v64_v45, 0.0  ;;  %v309_v63 = vsel %vm289_vm5, %v182_v49, %v308_v60  ;;  %v104_v17 = vsel %vm68_vm0, %v65_v46, 0.0 }
  0x45   :  { %v71_v16 = vadd.f32 %v70_v57, %v69_v54  ;;  %v78_v20 = vadd.f32 %v77_v58, %v76_v55  ;;  %v91_v21 = vrot.slane %v90_v62, 4  ;;  %v310_v22 = vsel %vm291_vm6, %v189_v50, %v309_v63 }
  0x46   :  { %v85_v23 = vadd.f32 %v84_v61, %v83_v59  ;;  %v98_v24 = vrot.slane %v97_v15, 4  ;;  %v311_v25 = vsel %vm293_vm7, %v196_v51, %v310_v22  ;;  %v105_v30 = vrot.slane %v104_v17, 4 }
  0x47   :  { %v72_v26 = vrot.slane %v71_v16, 2  ;;  %v79_v27 = vrot.slane %v78_v20, 2  ;;  %v92_v28 = vadd.f32 %v91_v21, %v90_v62  ;;  %313 = vst [vmem:[#allocation8] sm:$0xff] %v311_v25  ;;  %v111_v31 = vsel %vm68_vm0, %v66_v47, 0.0 }
  0x48   :  { %v86_v18 = vrot.slane %v85_v23, 2  ;;  %v99_v29 = vadd.f32 %v98_v24, %v97_v15  ;;  %v112_v35 = vrot.slane %v111_v31, 4 }
  0x49   :  { %v73_v32 = vadd.f32 %v72_v26, %v71_v16  ;;  %v80_v33 = vadd.f32 %v79_v27, %v78_v20  ;;  %v93_v34 = vrot.slane %v92_v28, 2 }
  0x4a   :  { %504 = shalt.err (!%p501_p6)
}
  0x4b   :  { %s505_s18 = scalar_lea.hbm %s799_s3, 128 }
  0x4c   :  { %p506_p7 = scmp.ne.s32.totalorder %s799_s3, %s505_s18  ;;  %p509_p8 = scmp.lt.u32.totalorder %s505_s18, %s799_s3 }
  0x4e   :  { %p511_p9 = pnand %p509_p8, %p506_p7 }
  0x50   :  { %514 = shalt.err (!%p511_p9)
}
  0x51   :  { %418 = dma.vmem_to_hbm [thread:$0]  %s416_s14, 128, %s799_s3, [#allocation9]   ;;  %v87_v36 = vadd.f32 %v86_v18, %v85_v23  ;;  %v100_v37 = vrot.slane %v99_v29, 2  ;;  %v106_v38 = vadd.f32 %v105_v30, %v104_v17  ;;  %v118_v39 = vsel %vm68_vm0, %v67_v53, 0.0 }
  0x52   :  { %v74_v40 = vrot.slane %v73_v32, 1  ;;  %v81_v41 = vrot.slane %v80_v33, 1  ;;  %v94_v42 = vadd.f32 %v93_v34, %v92_v28  ;;  %v113_v43 = vadd.f32 %v112_v35, %v111_v31  ;;  %s572_s3 = smov [#allocation7]  }
  0x53   :  { %v88_v44 = vrot.slane %v87_v36, 1  ;;  %v101_v45 = vadd.f32 %v100_v37, %v99_v29  ;;  %v107_v46 = vrot.slane %v106_v38, 2  ;;  %v119_v47 = vrot.slane %v118_v39, 4  ;;  %s405_s25 = sshll.u32 %s572_s3, 4  ;;  %s406_s25 = int_to_ptr.vmem [resolvable:$true] %s405_s25 }
  0x54   :  { %v75_v48 = vadd.f32 %v74_v40, %v73_v32  ;;  %v82_v49 = vadd.f32 %v81_v41, %v80_v33  ;;  %v95_v50 = vrot.slane %v94_v42, 1  ;;  %v114_v51 = vrot.slane %v113_v43, 2  ;;  %s515_s26 = scalar_lea.vmem %s406_s25, 128  ;;  %p520_p11 = scmp.lt.s32.totalorder %s406_s25, %s406_s25 }
  0x55   :  { %v89_v52 = vadd.f32 %v88_v44, %v87_v36  ;;  %v102_v54 = vrot.slane %v101_v45, 1  ;;  %v108_v55 = vadd.f32 %v107_v46, %v106_v38  ;;  %v120_v56 = vadd.f32 %v119_v47, %v118_v39  ;;  %p516_p10 = scmp.ne.s32.totalorder %s406_s25, %s515_s26  ;;  %p521_p12 = scmp.lt.s32.totalorder %s515_s26, %s515_s26 }
  0x56   :  { %v96_v57 = vadd.f32 %v95_v50, %v94_v42  ;;  %v115_v58 = vadd.f32 %v114_v51, %v113_v43  ;;  %v282_v53 = vsel %vm281_vm1, %v82_v49, %v75_v48  ;;  %v197_v59 = vsub.f32 1.0, %v639_v8 }
  0x57   :  { %v103_v60 = vadd.f32 %v102_v54, %v101_v45  ;;  %v109_v61 = vrot.slane %v108_v55, 1  ;;  %v121_v62 = vrot.slane %v120_v56, 2  ;;  %v284_v15 = vsel %vm283_vm2, %v89_v52, %v282_v53  ;;  %p522_p13 = por %p521_p12, %p520_p11 }
  0x58   :  { %v116_v63 = vrot.slane %v115_v58, 1  ;;  %v286_v16 = vsel %vm285_vm3, %v96_v57, %v284_v15  ;;  %v198_v20 = vsub.f32 1.0, %v641_v9  ;;  %v199_v21 = vsub.f32 1.0, %v643_v10 }
  0x59   :  { %v110_v22 = vadd.f32 %v109_v61, %v108_v55  ;;  %v122_v23 = vadd.f32 %v121_v62, %v120_v56  ;;  %v288_v24 = vsel %vm287_vm4, %v103_v60, %v286_v16  ;;  %v200_v17 = vsub.f32 1.0, %v645_v11  ;;  %p523_p0 = pnand %p522_p13, %p516_p10 }
  0x5a   :  { %v117_v25 = vadd.f32 %v116_v63, %v115_v58  ;;  %v201_v8 = vsub.f32 1.0, %v647_v12  ;;  %v202_v26 = vsub.f32 1.0, %v649_v13  ;;  %v203_v27 = vsub.f32 1.0, %v651_v14 }
  0x5b   :  { %v123_v28 = vrot.slane %v122_v23, 1  ;;  %v290_v18 = vsel %vm289_vm5, %v110_v22, %v288_v24  ;;  %v204_v9 = vsub.f32 1.0, %v669_v19  ;;  %v205_v10 = vmul.f32 %v197_v59, %v623_v0 }
  0x5c   :  { %v292_v29 = vsel %vm291_vm6, %v117_v25, %v290_v18  ;;  %v206_v11 = vmul.f32 %v198_v20, %v625_v1  ;;  %v207_v30 = vmul.f32 %v199_v21, %v627_v2  ;;  %v208_v12 = vmul.f32 %v200_v17, %v629_v3 }
  0x5d   :  { %v124_v13 = vadd.f32 %v123_v28, %v122_v23  ;;  %v209_v14 = vmul.f32 %v201_v8, %v631_v4  ;;  %v210_v31 = vmul.f32 %v202_v26, %v633_v5  ;;  %v211_v32 = vmul.f32 %v203_v27, %v635_v6 }
  0x5e   :  { %v212_v19 = vmul.f32 %v204_v9, %v637_v7  ;;  %v213_v0 = vsel %vm68_vm0, %v205_v10, 0.0  ;;  %v220_v33 = vsel %vm68_vm0, %v206_v11, 0.0  ;;  %v227_v34 = vsel %vm68_vm0, %v207_v30, 0.0 }
  0x5f   :  { %v294_v1 = vsel %vm293_vm7, %v124_v13, %v292_v29  ;;  %v214_v2 = vrot.slane %v213_v0, 4  ;;  %v221_v3 = vrot.slane %v220_v33, 4  ;;  %v228_v35 = vrot.slane %v227_v34, 4 }
  0x60   :  { %296 = vst [vmem:[#allocation7] sm:$0xff] %v294_v1  ;;  %v234_v4 = vsel %vm68_vm0, %v208_v12, 0.0  ;;  %v241_v5 = vsel %vm68_vm0, %v209_v14, 0.0  ;;  %v248_v6 = vsel %vm68_vm0, %v210_v31, 0.0  ;;  %v255_v7 = vsel %vm68_vm0, %v211_v32, 0.0 }
  0x61   :  { %v215_v36 = vadd.f32 %v214_v2, %v213_v0  ;;  %v222_v37 = vadd.f32 %v221_v3, %v220_v33  ;;  %v229_v38 = vadd.f32 %v228_v35, %v227_v34  ;;  %v235_v39 = vrot.slane %v234_v4, 4 }
  0x62   :  { %526 = shalt.err (!%p523_p0)
}
  0x63   :  { %s527_s29 = scalar_lea.hbm %s798_s2, 128 }
  0x64   :  { %p528_p1 = scmp.ne.s32.totalorder %s798_s2, %s527_s29  ;;  %p531_p2 = scmp.lt.u32.totalorder %s527_s29, %s798_s2 }
  0x66   :  { %p533_p3 = pnand %p531_p2, %p528_p1 }
  0x68   :  { %536 = shalt.err (!%p533_p3)
}
  0x69   :  { %408 = dma.vmem_to_hbm [thread:$0]  %s406_s25, 128, %s798_s2, [#allocation4]   ;;  %v242_v40 = vrot.slane %v241_v5, 4  ;;  %v249_v41 = vrot.slane %v248_v6, 4  ;;  %v256_v42 = vrot.slane %v255_v7, 4  ;;  %v262_v43 = vsel %vm68_vm0, %v212_v19, 0.0 }
  0x6a   :  { %v216_v44 = vrot.slane %v215_v36, 2  ;;  %v223_v45 = vrot.slane %v222_v37, 2  ;;  %v230_v46 = vrot.slane %v229_v38, 2  ;;  %v236_v47 = vadd.f32 %v235_v39, %v234_v4  ;;  %s573_s2 = smov [#allocation10]  }
  0x6b   :  { %v243_v48 = vadd.f32 %v242_v40, %v241_v5  ;;  %v250_v49 = vadd.f32 %v249_v41, %v248_v6  ;;  %v257_v50 = vadd.f32 %v256_v42, %v255_v7  ;;  %v263_v51 = vrot.slane %v262_v43, 4  ;;  %s425_s10 = sshll.u32 %s573_s2, 4  ;;  %s426_s10 = int_to_ptr.vmem [resolvable:$true] %s425_s10 }
  0x6c   :  { %v217_v52 = vadd.f32 %v216_v44, %v215_v36  ;;  %v224_v54 = vadd.f32 %v223_v45, %v222_v37  ;;  %v231_v55 = vadd.f32 %v230_v46, %v229_v38  ;;  %v237_v56 = vrot.slane %v236_v47, 2  ;;  %s537_s11 = scalar_lea.vmem %s426_s10, 128  ;;  %p542_p5 = scmp.lt.s32.totalorder %s426_s10, %s426_s10 }
  0x6d   :  { %v244_v57 = vrot.slane %v243_v48, 2  ;;  %v251_v58 = vrot.slane %v250_v49, 2  ;;  %v258_v53 = vrot.slane %v257_v50, 2  ;;  %v264_v59 = vadd.f32 %v263_v51, %v262_v43  ;;  %p538_p4 = scmp.ne.s32.totalorder %s426_s10, %s537_s11  ;;  %p543_p6 = scmp.lt.s32.totalorder %s537_s11, %s537_s11 }
  0x6e   :  { %v218_v60 = vrot.slane %v217_v52, 1  ;;  %v225_v61 = vrot.slane %v224_v54, 1  ;;  %v232_v62 = vrot.slane %v231_v55, 1  ;;  %v238_v15 = vadd.f32 %v237_v56, %v236_v47 }
  0x6f   :  { %v245_v63 = vadd.f32 %v244_v57, %v243_v48  ;;  %v252_v16 = vadd.f32 %v251_v58, %v250_v49  ;;  %v259_v20 = vadd.f32 %v258_v53, %v257_v50  ;;  %v265_v21 = vrot.slane %v264_v59, 2  ;;  %p544_p7 = por %p543_p6, %p542_p5 }
  0x70   :  { %v219_v22 = vadd.f32 %v218_v60, %v217_v52  ;;  %v226_v23 = vadd.f32 %v225_v61, %v224_v54  ;;  %v233_v24 = vadd.f32 %v232_v62, %v231_v55  ;;  %v239_v17 = vrot.slane %v238_v15, 1 }
  0x71   :  { %v246_v25 = vrot.slane %v245_v63, 1  ;;  %v253_v8 = vrot.slane %v252_v16, 1  ;;  %v260_v26 = vrot.slane %v259_v20, 1  ;;  %v266_v27 = vadd.f32 %v265_v21, %v264_v59  ;;  %p545_p8 = pnand %p544_p7, %p538_p4 }
  0x72   :  { %v240_v28 = vadd.f32 %v239_v17, %v238_v15  ;;  %v322_v18 = vsel %vm281_vm1, %v226_v23, %v219_v22 }
  0x73   :  { %v247_v9 = vadd.f32 %v246_v25, %v245_v63  ;;  %v254_v10 = vadd.f32 %v253_v8, %v252_v16  ;;  %v267_v29 = vrot.slane %v266_v27, 1  ;;  %v261_v11 = vadd.f32 %v260_v26, %v259_v20 }
  0x74   :  { %v323_v30 = vsel %vm283_vm2, %v233_v24, %v322_v18 }
  0x75   :  { %v268_v12 = vadd.f32 %v267_v29, %v266_v27  ;;  %v324_v13 = vsel %vm285_vm3, %v240_v28, %v323_v30 }
  0x76   :  { %v325_v14 = vsel %vm287_vm4, %v247_v9, %v324_v13 }
  0x77   :  { %v326_v31 = vsel %vm289_vm5, %v254_v10, %v325_v14 }
  0x78   :  { %v327_v32 = vsel %vm291_vm6, %v261_v11, %v326_v31 }
  0x79   :  { %v328_v19 = vsel %vm293_vm7, %v268_v12, %v327_v32 }
  0x7a   :  { %330 = vst [vmem:[#allocation10] sm:$0xff] %v328_v19 }
  0x7b   :  { %548 = shalt.err (!%p545_p8)
}
  0x7c   :  { %s549_s13 = scalar_lea.hbm %s800_s4, 128 }
  0x7d   :  { %p550_p9 = scmp.ne.s32.totalorder %s800_s4, %s549_s13  ;;  %p553_p10 = scmp.lt.u32.totalorder %s549_s13, %s800_s4 }
  0x7f   :  { %p555_p11 = pnand %p553_p10, %p550_p9 }
  0x81   :  { %558 = shalt.err (!%p555_p11)
}
  0x82   :  { %428 = dma.vmem_to_hbm [thread:$0]  %s426_s10, 128, %s800_s4, [#allocation9]  }
  0x83   :  { %563 = dma.done.wait [#allocation4], 128  }
  0x84   :  { %564 = vsyncadd [#allocation4], 4294967168 }
  0x85   :  { %565 = dma.done.wait [#allocation9], 256  }
  0x86   :  { %566 = vsyncadd [#allocation9], 4294967040 }
  0x87   :  { %438 = vsyncpa [#allocation3], 1 }
  0x88   :  { %439 = vsyncpa [#allocation6], 1 }
  0x89   :  { %440 = vsyncpa [#allocation4], 1 }
  0x8a   :  { %441 = vsyncpa [#allocation9], 1 }

</bundles_post_ra>
